<compile_context>
chip_gen: v7x
topology: tpu7x:2x2x1
jax: 0.10.0
libtpu: 0.0.40
codegen_flags: <defaults>
</compile_context>

<pallas_src>
import functools
import math

import jax
import jax.numpy as jnp
from jax.experimental import pallas as pl
from jax.experimental.pallas import tpu as pltpu


_T_TILE = 512          # output-lane tile (multiple of 128)
_MXU_TILE = 128        # conservative MXU pass size (v5e); v6e/v7x are 256
_MAX_FOLDED_WEIGHT_BYTES = 4 << 20


def _round_up(n, m):
    return ((n + m - 1) // m) * m


# ----------------------------------------------------------------------------
# Glue: tile-major stride-phase split of the zero-padded input (bf16).
#   Returned slab: (B*n_t, stride, C, TT+H) where tile t holds phase columns
#   [t*TT, t*TT + TT + H) and ph[b, r, c, q] = x_padded[b, c, q*stride + r].
#   H >= (K-1)//stride is the halo, padded to a multiple of 128 for lane-dense
#   blocks; every in-kernel tap read is then a contiguous lane window.
# ----------------------------------------------------------------------------
def _tiling(t_out, kernel_size, stride):
    t_out_pad = _round_up(t_out, 128)
    tt = min(_T_TILE, t_out_pad)
    n_t = -(-t_out_pad // tt)
    q_max = (kernel_size - 1) // stride
    hpad = _round_up(q_max, 128) if q_max > 0 else 0
    return tt, n_t, hpad


def _tile_phase_split(x, pad, stride, tt, n_t, hpad):
    B, C, T = x.shape
    tt_in = tt + hpad
    l_total = max(n_t * tt + hpad, -(-(T + pad) // stride))
    right = stride * l_total - T - pad
    x_pp = jnp.pad(x, ((0, 0), (0, 0), (pad, right)))
    if stride == 1:
        ph = x_pp[:, None, :, :]                          # (B, 1, C, L) - no relayout
    else:
        ph = x_pp.reshape(B, C, l_total, stride)
        ph = jnp.transpose(ph, (0, 3, 1, 2))              # (B, stride, C, L)
    tiles = [ph[:, :, :, t * tt:t * tt + tt_in] for t in range(n_t)]
    xt = jnp.stack(tiles, axis=1)                         # (B, n_t, stride, C, TT+H)
    return xt.reshape(B * n_t, stride, C, tt_in)


# ----------------------------------------------------------------------------
# Pallas kernel: grouped Conv1d (taps folded into the MXU contraction)
#                + bias + optional LeakyReLU, per-group direct store.
# ----------------------------------------------------------------------------
def _conv1d_kernel(x_ref, w_ref, b_ref, o_ref, *, taps, groups, c_in_pg, tt, slope):
    # x_ref: (1, S, C_in, TT+H)              bf16 phase-split tile (halo included)
    # w_ref: (groups, C_out_pg, K*C_in_pg)   bf16
    # b_ref: (C_out, 1)                      f32
    # o_ref: (1, C_out, TT)                  bf16, lane-dense (TT % 128 == 0)
    c_out_pg = w_ref.shape[1]
    for g in range(groups):                               # static; only >1 for big layers
        ci0 = g * c_in_pg
        slab = jnp.concatenate(
            [x_ref[0, r, pl.ds(ci0, c_in_pg), pl.ds(q, tt)] for (r, q) in taps],
            axis=0)                                        # bf16 (K*C_in_pg, TT)
        acc = jnp.dot(w_ref[g], slab, preferred_element_type=jnp.float32)
        acc = acc + b_ref[pl.ds(g * c_out_pg, c_out_pg), :]
        if slope is not None:
            acc = jnp.where(acc >= 0, acc, slope * acc)
        o_ref[0, pl.ds(g * c_out_pg, c_out_pg), :] = acc.astype(o_ref.dtype)


def conv1d_pallas(x, p, c):
    """Grouped Conv1d on [B, C, T] with PyTorch semantics (pre-packed params)."""
    w_g, b2 = p["w_g"], p["b2"]
    k, stride, padding, lrelu = c["k"], c["stride"], c["padding"], c["lrelu"]
    groups, c_out_pg, kc = w_g.shape
    c_in_pg = kc // k
    c_out = groups * c_out_pg
    B, c_in, T = x.shape
    assert c_in == groups * c_in_pg
    t_out = (T + 2 * padding - k) // stride + 1
    assert t_out >= 1

    tt, n_t, hpad = _tiling(t_out, k, stride)
    tt_in = tt + hpad
    xt = _tile_phase_split(x.astype(jnp.bfloat16), padding, stride, tt, n_t, hpad)

    taps = tuple((kk % stride, kk // stride) for kk in range(k))
    kernel = functools.partial(_conv1d_kernel, taps=taps, groups=groups,
                               c_in_pg=c_in_pg, tt=tt,
                               slope=0.1 if lrelu else None)

    # Per-block VMEM budget (double-buffered in/out/weight + in-kernel temps).
    in_blk = stride * c_in * tt_in * 2
    out_blk = c_out * tt * 2
    w_bytes = groups * c_out_pg * kc * 2
    temps = kc * tt * 2 + c_out_pg * tt * 4
    needed = 2 * (in_blk + out_blk + w_bytes) + 2 * temps + (2 << 20)
    vmem_limit = int(min(max(needed, 32 << 20), 64 << 20))

    cost = pl.CostEstimate(
        flops=2 * B * t_out * c_out * kc,
        transcendentals=0,
        bytes_accessed=int(xt.size) * 2 + w_bytes + B * c_out * n_t * tt * 2 + c_out * 4)

    nt = n_t  # captured by the input index_map
    out = pl.pallas_call(
        kernel,
        out_shape=jax.ShapeDtypeStruct((B, c_out, n_t * tt), jnp.bfloat16),
        grid=(B, n_t),
        in_specs=[
            pl.BlockSpec((1, stride, c_in, tt_in), lambda b, t: (b * nt + t, 0, 0, 0)),
            pl.BlockSpec((groups, c_out_pg, kc), lambda b, t: (0, 0, 0)),
            pl.BlockSpec((c_out, 1), lambda b, t: (0, 0)),
        ],
        out_specs=pl.BlockSpec((1, c_out, tt), lambda b, t: (b, 0, t)),
        compiler_params=pltpu.CompilerParams(
            dimension_semantics=("parallel", "parallel"),
            vmem_limit_bytes=vmem_limit),
        cost_estimate=cost,
    )(xt, w_g, b2)
    return out[:, :, :t_out]


# ----------------------------------------------------------------------------
# Pallas kernel: AvgPool1d (count_include_pad=True), pure VPU.
# ----------------------------------------------------------------------------
def _avgpool1d_kernel(x_ref, o_ref, *, taps, inv_k, tt):
    r0, q0 = taps[0]
    acc = x_ref[0, r0, :, pl.ds(q0, tt)].astype(jnp.float32)
    for (r, q) in taps[1:]:
        acc = acc + x_ref[0, r, :, pl.ds(q, tt)].astype(jnp.float32)
    o_ref[0, :, :] = (acc * inv_k).astype(o_ref.dtype)


def avg_pool1d_pallas(x, *, kernel_size=4, stride=2, padding=2):
    B, C, T = x.shape
    t_out = (T + 2 * padding - kernel_size) // stride + 1
    assert t_out >= 1
    tt, n_t, hpad = _tiling(t_out, kernel_size, stride)
    tt_in = tt + hpad
    xt = _tile_phase_split(x.astype(jnp.bfloat16), padding, stride, tt, n_t, hpad)
    taps = tuple((kk % stride, kk // stride) for kk in range(kernel_size))
    kernel = functools.partial(_avgpool1d_kernel, taps=taps,
                               inv_k=1.0 / kernel_size, tt=tt)
    cost = pl.CostEstimate(
        flops=B * C * t_out * kernel_size, transcendentals=0,
        bytes_accessed=int(xt.size) * 2 + B * C * n_t * tt * 2)
    nt = n_t
    out = pl.pallas_call(
        kernel,
        out_shape=jax.ShapeDtypeStruct((B, C, n_t * tt), jnp.bfloat16),
        grid=(B, n_t),
        in_specs=[pl.BlockSpec((1, stride, C, tt_in), lambda b, t: (b * nt + t, 0, 0, 0))],
        out_specs=pl.BlockSpec((1, C, tt), lambda b, t: (b, 0, t)),
        compiler_params=pltpu.CompilerParams(
            dimension_semantics=("parallel", "parallel")),
        cost_estimate=cost,
    )(xt)
    return out[:, :, :t_out]


# ----------------------------------------------------------------------------
# Parameter setup (plain JAX glue, runs once)
# ----------------------------------------------------------------------------
def _init_conv_params(key, c_in, c_out, k, groups):
    c_in_pg = c_in // groups
    bound = 1.0 / math.sqrt(c_in_pg * k)
    kw, kb = jax.random.split(key)
    w = jax.random.uniform(kw, (c_out, c_in_pg, k), jnp.float32, -bound, bound)
    b = jax.random.uniform(kb, (c_out,), jnp.float32, -bound, bound)
    return w, b


def _spectral_normalize(w, key, n_iter=1):
    # One deterministic power iteration, mirroring nn.utils.spectral_norm at init.
    c_out = w.shape[0]
    w_mat = w.reshape(c_out, -1)
    u = jax.random.normal(key, (c_out,), jnp.float32)
    u = u / (jnp.linalg.norm(u) + 1e-12)
    v = w_mat.T @ u
    for _ in range(n_iter):
        v = w_mat.T @ u
        v = v / (jnp.linalg.norm(v) + 1e-12)
        u = w_mat @ v
        u = u / (jnp.linalg.norm(u) + 1e-12)
    sigma = u @ (w_mat @ v)
    return w / sigma


def _should_fold_groups(w, groups):
    """Fold groups block-diagonally only when a group's dot under-fills an MXU
    pass AND the folded weight stays small; never fold when both dims already
    fill a pass (that would waste FLOPs on zero blocks)."""
    if groups == 1:
        return False
    c_out, c_in_pg, k = w.shape
    c_out_pg = c_out // groups
    kc = k * c_in_pg
    if c_out_pg >= _MXU_TILE and kc >= _MXU_TILE:
        return False
    folded_bytes = c_out * (c_in_pg * groups) * k * 2      # bf16
    return folded_bytes <= _MAX_FOLDED_WEIGHT_BYTES


def _fold_block_diagonal(w, groups):
    c_out, c_in_pg, k = w.shape
    c_out_pg = c_out // groups
    w_full = jnp.zeros((c_out, c_in_pg * groups, k), w.dtype)
    for g in range(groups):
        w_full = w_full.at[g * c_out_pg:(g + 1) * c_out_pg,
                           g * c_in_pg:(g + 1) * c_in_pg, :].set(
            w[g * c_out_pg:(g + 1) * c_out_pg])
    return w_full


def _pack_conv_params(w, b, stride, padding, groups, lrelu, *, allow_fold=True):
    """One-time repack: (optional block-diagonal fold) + weight -> bf16
    (groups, C_out_pg, K*C_in_pg) with column order k*C_in_pg + ci, bias -> (C_out,1)."""
    c_out, c_in_pg, k = w.shape
    if allow_fold and _should_fold_groups(w, groups):
        w = _fold_block_diagonal(w, groups)
        groups = 1
        c_in_pg = w.shape[1]
    c_out_pg = c_out // groups
    w_g = w.reshape(groups, c_out_pg, c_in_pg, k)
    w_g = jnp.transpose(w_g, (0, 1, 3, 2)).reshape(groups, c_out_pg, k * c_in_pg)
    w_g = w_g.astype(jnp.bfloat16)
    b2 = b.reshape(c_out, 1).astype(jnp.float32)
    params = dict(w_g=w_g, b2=b2)
    cfg = dict(k=k, stride=stride, padding=padding, lrelu=lrelu)
    return params, cfg


def build_scale_discriminator_params(key, cfg, apply_spectral_norm):
    chans = [cfg["in_channels"]] + list(cfg["hidden_channels"])
    params, layer_cfgs = [], []
    for i, (k, s, g) in enumerate(zip(cfg["kernel_sizes"], cfg["strides"],
                                      cfg["groups"])):
        key, sub = jax.random.split(key)
        w, b = _init_conv_params(sub, chans[i], chans[i + 1], k, g)
        if apply_spectral_norm:
            key, su = jax.random.split(key)
            w = _spectral_normalize(w, su)
        # weight_norm at init is identity on the effective weight (g = ||v||).
        p, c = _pack_conv_params(w, b, s, (k - 1) // 2, g, True)
        params.append(p)
        layer_cfgs.append(c)
    key, sub = jax.random.split(key)
    w, b = _init_conv_params(sub, chans[-1], cfg["out_channels"],
                             cfg["out_kernel_size"], 1)
    if apply_spectral_norm:
        key, su = jax.random.split(key)
        w = _spectral_normalize(w, su)
    p, c = _pack_conv_params(w, b, 1, (cfg["out_kernel_size"] - 1) // 2, 1, False)
    params.append(p)
    layer_cfgs.append(c)
    return params, layer_cfgs


# ----------------------------------------------------------------------------
# Forward passes (mirror the PyTorch module structure exactly)
# ----------------------------------------------------------------------------
def scale_discriminator_forward(x, params, layer_cfgs):
    out = x
    layer_outputs = []
    for p, c in zip(params, layer_cfgs):
        out = conv1d_pallas(out, p, c)
        layer_outputs.append(out)
    return out, layer_outputs


def multi_scale_discriminator_forward(x, all_params, *, all_cfgs, pooling_cfg):
    outputs = []
    layer_outputs = []
    out = x
    for params, cfgs in zip(all_params, all_cfgs):
        out, louts = scale_discriminator_forward(out, params, cfgs)
        outputs.append(out)
        layer_outputs += louts
        # Matches the provided PyTorch forward exactly: pooling is applied to the
        # discriminator *output* (which feeds the next discriminator), including
        # after the last one (result discarded there).
        out = avg_pool1d_pallas(out, **pooling_cfg)
    return outputs, layer_outputs


# ----------------------------------------------------------------------------
# Self-check of the conv kernel (folded and per-group paths) against lax.conv.
# ----------------------------------------------------------------------------
def _conv1d_reference(x, w, b, stride, padding, groups, lrelu):
    y = jax.lax.conv_general_dilated(
        x, w, window_strides=(stride,), padding=[(padding, padding)],
        dimension_numbers=("NCH", "OIH", "NCH"), feature_group_count=groups)
    y = y + b[None, :, None]
    if lrelu:
        y = jnp.where(y >= 0, y, 0.1 * y)
    return y


def _self_test_conv(key):
    B, c_in, c_out, T, K, S, G = 2, 16, 32, 96, 7, 2, 4
    kx, kw = jax.random.split(key)
    x = jax.random.normal(kx, (B, c_in, T), jnp.float32)
    w, b = _init_conv_params(kw, c_in, c_out, K, G)
    # Apples-to-apples: reference uses the same bf16-quantized weights/activations.
    x_q = x.astype(jnp.bfloat16).astype(jnp.float32)
    w_q = w.astype(jnp.bfloat16).astype(jnp.float32)
    ref = _conv1d_reference(x_q, w_q, b, S, (K - 1) // 2, G, True)
    for allow_fold in (True, False):   # folded block-diagonal path and per-group path
        p, c = _pack_conv_params(w, b, S, (K - 1) // 2, G, True, allow_fold=allow_fold)
        got = conv1d_pallas(x, p, c).astype(jnp.float32)
        err = float(jnp.max(jnp.abs(got - ref)))
        tol = 2e-2 * (float(jnp.max(jnp.abs(ref))) + 1.0)
        assert err <= tol, (allow_fold, err, tol)


# ----------------------------------------------------------------------------
if __name__ == "__main__":
    # Small but structurally faithful config (strided + grouped layers, same
    # structure as model_config["scale_discriminator"]).
    cfg = dict(
        in_channels=1,
        out_channels=1,
        hidden_channels=[16, 32, 32, 32],
        kernel_sizes=[5, 7, 7, 5],
        strides=[1, 2, 2, 1],
        groups=[1, 2, 4, 8],
        out_kernel_size=3,
    )
    pooling_cfg = dict(kernel_size=4, stride=2, padding=2)

    key = jax.random.PRNGKey(0)

    key, kt = jax.random.split(key)
    _self_test_conv(kt)                                    # eager-mode kernel check

    key, kx = jax.random.split(key)
    x = jax.random.normal(kx, (2, 1, 64), jnp.float32)     # [B, C, T]

    all_params, all_cfgs = [], []
    for d in range(3):
        key, kd = jax.random.split(key)
        p, c = build_scale_discriminator_params(kd, cfg, apply_spectral_norm=(d == 0))
        all_params.append(p)
        all_cfgs.append(c)

    fwd = jax.jit(functools.partial(multi_scale_discriminator_forward,
                                    all_cfgs=all_cfgs, pooling_cfg=pooling_cfg))
    outputs, layer_outputs = fwd(x, all_params)
    jax.block_until_ready((outputs, layer_outputs))

    assert len(outputs) == 3
    assert len(layer_outputs) == 3 * (len(cfg["hidden_channels"]) + 1)
    assert all(bool(jnp.all(jnp.isfinite(o.astype(jnp.float32)))) for o in outputs)
    print("KERNEL_OK")
</pallas_src>

<mosaic_0001>
module attributes {stable_mosaic.version = 11 : i64} {
  func.func @_conv1d_kernel(%arg0: i32, %arg1: i32, %arg2: memref<1x2x16x256xbf16, #tpu.memory_space<vmem>>, %arg3: memref<1x32x112xbf16, #tpu.memory_space<vmem>>, %arg4: memref<32x1xf32, #tpu.memory_space<vmem>>, %arg5: memref<1x32x128xbf16, #tpu.memory_space<vmem>>) attributes {dimension_semantics = [#tpu.dimension_semantics<parallel>, #tpu.dimension_semantics<parallel>], iteration_bounds = array<i64: 2, 1>, scalar_prefetch = 0 : i64, scratch_operands = 0 : i64, tpu.core_type = #tpu.core_type<tc>, window_params = [{transform_indices = @transform_0, window_bounds = array<i64: 1, 2, 16, 256>}, {pipeline_mode = #tpu.pipeline_mode<synchronous>, transform_indices = @transform_1, window_bounds = array<i64: 1, 32, 112>}, {pipeline_mode = #tpu.pipeline_mode<synchronous>, transform_indices = @transform_2, window_bounds = array<i64: 32, 1>}, {transform_indices = @transform_3, window_bounds = array<i64: 1, 32, 128>}]} {
    %c0 = arith.constant 0 : index
    %c0_0 = arith.constant 0 : index
    %c0_1 = arith.constant 0 : index
    %c0_2 = arith.constant 0 : index
    %0 = vector.load %arg2[%c0, %c0_0, %c0_1, %c0_2] : memref<1x2x16x256xbf16, #tpu.memory_space<vmem>>, vector<1x1x16x128xbf16>
    %1 = vector.shape_cast %0 : vector<1x1x16x128xbf16> to vector<16x128xbf16>
    %c0_3 = arith.constant 0 : index
    %c1 = arith.constant 1 : index
    %c0_4 = arith.constant 0 : index
    %c0_5 = arith.constant 0 : index
    %2 = vector.load %arg2[%c0_3, %c1, %c0_4, %c0_5] : memref<1x2x16x256xbf16, #tpu.memory_space<vmem>>, vector<1x1x16x128xbf16>
    %3 = vector.shape_cast %2 : vector<1x1x16x128xbf16> to vector<16x128xbf16>
    %c0_6 = arith.constant 0 : index
    %c0_7 = arith.constant 0 : index
    %c0_8 = arith.constant 0 : index
    %c1_9 = arith.constant 1 : index
    %4 = vector.load %arg2[%c0_6, %c0_7, %c0_8, %c1_9] : memref<1x2x16x256xbf16, #tpu.memory_space<vmem>>, vector<1x1x16x128xbf16>
    %5 = vector.shape_cast %4 : vector<1x1x16x128xbf16> to vector<16x128xbf16>
    %c0_10 = arith.constant 0 : index
    %c1_11 = arith.constant 1 : index
    %c0_12 = arith.constant 0 : index
    %c1_13 = arith.constant 1 : index
    %6 = vector.load %arg2[%c0_10, %c1_11, %c0_12, %c1_13] : memref<1x2x16x256xbf16, #tpu.memory_space<vmem>>, vector<1x1x16x128xbf16>
    %7 = vector.shape_cast %6 : vector<1x1x16x128xbf16> to vector<16x128xbf16>
    %c0_14 = arith.constant 0 : index
    %c0_15 = arith.constant 0 : index
    %c0_16 = arith.constant 0 : index
    %c2 = arith.constant 2 : index
    %8 = vector.load %arg2[%c0_14, %c0_15, %c0_16, %c2] : memref<1x2x16x256xbf16, #tpu.memory_space<vmem>>, vector<1x1x16x128xbf16>
    %9 = vector.shape_cast %8 : vector<1x1x16x128xbf16> to vector<16x128xbf16>
    %c0_17 = arith.constant 0 : index
    %c1_18 = arith.constant 1 : index
    %c0_19 = arith.constant 0 : index
    %c2_20 = arith.constant 2 : index
    %10 = vector.load %arg2[%c0_17, %c1_18, %c0_19, %c2_20] : memref<1x2x16x256xbf16, #tpu.memory_space<vmem>>, vector<1x1x16x128xbf16>
    %11 = vector.shape_cast %10 : vector<1x1x16x128xbf16> to vector<16x128xbf16>
    %c0_21 = arith.constant 0 : index
    %c0_22 = arith.constant 0 : index
    %c0_23 = arith.constant 0 : index
    %c3 = arith.constant 3 : index
    %12 = vector.load %arg2[%c0_21, %c0_22, %c0_23, %c3] : memref<1x2x16x256xbf16, #tpu.memory_space<vmem>>, vector<1x1x16x128xbf16>
    %13 = vector.shape_cast %12 : vector<1x1x16x128xbf16> to vector<16x128xbf16>
    %14 = tpu.concatenate %1, %3, %5, %7, %9, %11, %13 in 0 : vector<16x128xbf16>, vector<16x128xbf16>, vector<16x128xbf16>, vector<16x128xbf16>, vector<16x128xbf16>, vector<16x128xbf16>, vector<16x128xbf16> -> vector<112x128xbf16>
    %c0_24 = arith.constant 0 : index
    %c0_25 = arith.constant 0 : index
    %c0_26 = arith.constant 0 : index
    %15 = vector.load %arg3[%c0_24, %c0_25, %c0_26] : memref<1x32x112xbf16, #tpu.memory_space<vmem>>, vector<1x32x112xbf16>
    %16 = vector.shape_cast %15 : vector<1x32x112xbf16> to vector<32x112xbf16>
    %cst = arith.constant dense<0.000000e+00> : vector<32x128xf32>
    %17 = tpu.matmul %16, %14, %cst {dimension_numbers = #tpu.dot_dimension_numbers<[1], [0], [0], [1], [0, 0, 1, 1], [], []>} : vector<32x112xbf16>, vector<112x128xbf16>, vector<32x128xf32> -> vector<32x128xf32>
    %c0_27 = arith.constant 0 : index
    %c0_28 = arith.constant 0 : index
    %18 = vector.load %arg4[%c0_27, %c0_28] : memref<32x1xf32, #tpu.memory_space<vmem>>, vector<32x1xf32>
    %19 = vector.broadcast %18 : vector<32x1xf32> to vector<32x128xf32>
    %20 = arith.addf %17, %19 : vector<32x128xf32>
    %cst_29 = arith.constant 0.000000e+00 : f32
    %21 = vector.broadcast %cst_29 : f32 to vector<32x128xf32>
    %22 = arith.cmpf oge, %20, %21 : vector<32x128xf32>
    %cst_30 = arith.constant 1.000000e-01 : f32
    %23 = vector.broadcast %cst_30 : f32 to vector<32x128xf32>
    %24 = arith.mulf %23, %20 : vector<32x128xf32>
    %25 = arith.select %22, %20, %24 : vector<32x128xi1>, vector<32x128xf32>
    %26 = arith.truncf %25 : vector<32x128xf32> to vector<32x128xbf16>
    %c0_31 = arith.constant 0 : index
    %c0_32 = arith.constant 0 : index
    %c0_33 = arith.constant 0 : index
    %27 = vector.load %arg5[%c0_31, %c0_32, %c0_33] : memref<1x32x128xbf16, #tpu.memory_space<vmem>>, vector<1x32x128xbf16>
    %28 = vector.shape_cast %27 : vector<1x32x128xbf16> to vector<32x128xbf16>
    %29 = vector.shape_cast %26 : vector<32x128xbf16> to vector<1x32x128xbf16>
    tpu.vector_store %arg5[%c0_31, %c0_32, %c0_33], %29 {strides = array<i32>} : memref<1x32x128xbf16, #tpu.memory_space<vmem>>, vector<1x32x128xbf16>,
    return
  }
  func.func @transform_0(%arg0: i32, %arg1: i32) -> (i32, i32, i32, i32) {
    %c1_i32 = arith.constant 1 : i32
    %0 = arith.muli %arg0, %c1_i32 : i32
    %1 = arith.addi %0, %arg1 : i32
    %c0_i32 = arith.constant 0 : i32
    %c0_i32_0 = arith.constant 0 : i32
    %c0_i32_1 = arith.constant 0 : i32
    %c0_i32_2 = arith.constant 0 : i32
    return %1, %c0_i32, %c0_i32_0, %c0_i32_1 : i32, i32, i32, i32
  }
  func.func @transform_1(%arg0: i32, %arg1: i32) -> (i32, i32, i32) {
    %c0_i32 = arith.constant 0 : i32
    %c0_i32_0 = arith.constant 0 : i32
    %c0_i32_1 = arith.constant 0 : i32
    %c0_i32_2 = arith.constant 0 : i32
    return %c0_i32, %c0_i32_0, %c0_i32_1 : i32, i32, i32
  }
  func.func @transform_2(%arg0: i32, %arg1: i32) -> (i32, i32) {
    %c0_i32 = arith.constant 0 : i32
    %c0_i32_0 = arith.constant 0 : i32
    %c0_i32_1 = arith.constant 0 : i32
    return %c0_i32, %c0_i32_0 : i32, i32
  }
  func.func @transform_3(%arg0: i32, %arg1: i32) -> (i32, i32, i32) {
    %c0_i32 = arith.constant 0 : i32
    %c0_i32_0 = arith.constant 0 : i32
    return %arg0, %c0_i32, %arg1 : i32, i32, i32
  }
}

</mosaic_0001>

<bundles_post_ra>
// kernel: tpu_custom_call.1
= control target key start
LH: loop header
LB: loop body
LE: loop exit
PB: predicated region body
PF: predicated region fallthrough
CT: control target
= control target key end

     0   :  { %8 = vsyncpa [#allocation3], 0  ;;  %s1002_s0 = inlined_call_operand.hbm [shape: bf16[2,2,16,256], index: 0, kind: input, shape index: {}]   ;;  %s1003_s1 = inlined_call_operand.vmem [shape: bf16[1,32,112], index: 1, kind: input, shape index: {}]   ;;  %s1004_s2 = inlined_call_operand.vmem [shape: f32[32,1], index: 2, kind: input, shape index: {}]   ;;  %s1005_s3 = inlined_call_operand.hbm [shape: bf16[2,32,128], index: 3, kind: output, shape index: {}]  }
   0x1   :  { %10 = vsyncpa [#allocation3 + $0x1], 0 }
   0x2   :  { %11 = vsyncpa [#allocation4], 0 }
   0x3   :  { %13 = vsyncpa [#allocation4 + $0x1], 0  ;;  %s806_s12 = smov 0   ;;  %s808_s13 = smov 0  }
   0x4   :  { %s810_s14 = smov 0   ;;  %s812_s15 = smov 0  }
   0x5   :  { %s814_s16 = smov 0   ;;  %s816_s17 = smov 0  }
   0x6 LB: > { %s503_s18 = sadd.s32 4294967295, %s774_s17   ;;  %s504_s19 = sadd.s32 4294967294, %s774_s17   ;;  %s774_s17 = sphi %s816_s17, %s19_s17   ;;  %s770_s16 = sphi %s814_s16, %s1020_s16   ;;  %s766_s15 = sphi %s812_s15, %s1019_s15   ;;  %s762_s14 = sphi %s810_s14, %s1018_s14   ;;  %s758_s13 = sphi %s808_s13, %s1017_s13   ;;  %s754_s12 = sphi %s806_s12, %s1016_s12  }
   0x7   : > { %s31_s20 = sadd.s32 1, %s770_s16  ;;  %s40_s21 = sadd.s32 1, %s762_s14 }
   0x8   : > { %p33_p0 = scmp.ge.s32.totalorder %s31_s20, 2  ;;  %p47_p1 = scmp.ne.s32.totalorder %s762_s14, %s758_s13 }
   0x9   : > { %p48_p2 = scmp.eq.s32.totalorder %s774_s17, 0  ;;  %p53_p3 = scmp.ne.s32.totalorder %s758_s13, %s754_s12 }
   0xa   : > { %s1022_s20 = smov (%p33_p0, %s31_s20), 0  ;;  %p54_p5 = scmp.eq.s32.totalorder %s503_s18, 0 }
   0xb   : > { %p847_p4 = por %p48_p2, %p47_p1  ;;  %s37_s23 = ssub.s32 %s770_s16, %s1022_s20 }
   0xc   : > { %p121_p6 = scmp.eq.s32.totalorder %s503_s18, 1  ;;  %p38_p7 = scmp.eq.s32.totalorder %s37_s23, 0 }
   0xd   : > { %p853_p8 = por %p54_p5, %p53_p3  ;;  %p127_p10 = scmp.eq.s32.totalorder %s504_s19, 1 }
   0xe   : > { %p857_p9 = por %p121_p6, %p47_p1  ;;  %p592_p13 = scmp.lt.s32.totalorder %s774_s17, 2 }
   0xf   : > { %s862_s26 = scalar_select %p38_p7, %s762_s14, %s40_s21  }
  0x10   : > { %s1009_s25 = scalar_select %p857_p9, 1, 0 }
  0x11   : > { %p864_p11 = por %p127_p10, %p53_p3  ;;  %s153_s28 = sand.u32 1, %s762_s14  }
  0x12   : > { %s507_s29 = sshll.u32 %s153_s28, 5  ;;  %s536_s30 = sshll.u32 %s770_s16, 9 }
  0x13   : > { %s1010_s27 = scalar_select %p864_p11, 1, 0 }
  0x14   : > { %s875_s6 = scalar_lea.hbm %s1002_s0, %s536_s30  ;;  %s157_s7 = scalar_lea.vmem [#allocation2], %s507_s29 }
  0x15   : > { %s165_s8 = sshll.u32 %s157_s7, 4  ;;  %p881_p0 = pnand %p592_p13, %p847_p4  ;;  %s877_s8 = int_to_ptr.vmem [resolvable:$true] %s165_s8 }
  0x16   : > { %s886_s10 = scalar_lea.sflag [#allocation3], %s153_s28  ;;  %s662_s11 = scalar_lea.hbm %s875_s6, 512 }
  0x17   : > { %p663_p2 = scmp.ne.s32.totalorder %s875_s6, %s662_s11  ;;  %p664_p3 = pneg %p881_p0 }
  0x18   : > { %s667_s21 = scalar_lea.hbm %s1002_s0, 1024  ;;  %p668_p4 = scmp.lt.u32.totalorder %s875_s6, %s1002_s0 }
  0x19   : > { %p665_p5 = pnand %p664_p3, %p663_p2  ;;  %p669_p7 = scmp.lt.u32.totalorder %s667_s21, %s662_s11 }
  0x1a   : > { %p671_p13 = scmp.lt.u32.totalorder %s662_s11, %s875_s6 }
  0x1b   : > { %p666_p6 = pneg %p665_p5  ;;  %p670_p10 = por %p669_p7, %p668_p4 }
  0x1d   : > { %p672_p12 = por %p671_p13, %p670_p10 }
  0x1f   : > { %p673_p1 = pnand %p672_p12, %p666_p6 }
  0x21   : > { %676 = shalt.err (!%p673_p1)
}
  0x22   : > { %s677_s28 = scalar_lea.vmem %s877_s8, 512  ;;  %s776_s29 = smov [#allocation2]  }
  0x23   : > { %p678_p2 = scmp.ne.s32.totalorder %s877_s8, %s677_s28  ;;  %s682_s30 = sshll.u32 %s776_s29, 4  ;;  %s683_s30 = int_to_ptr.vmem [resolvable:$false] %s682_s30 }
  0x24   : > { %s684_s4 = scalar_lea.vmem %s683_s30, 1024  ;;  %p685_p9 = scmp.lt.s32.totalorder %s877_s8, %s683_s30 }
  0x25   : > { %p680_p5 = pnand %p678_p2, %p664_p3  ;;  %p686_p4 = scmp.lt.s32.totalorder %s684_s4, %s677_s28 }
  0x27   : > { %p681_p11 = pneg %p680_p5  ;;  %p687_p7 = por %p686_p4, %p685_p9 }
  0x29   : > { %p688_p10 = pnand %p687_p7, %p681_p11 }
  0x2b   : > { %691 = shalt.err (!%p688_p10)
}
  0x2c   : > { %s777_s5 = smov 128   ;;  %s778_s7 = smov 8  }
  0x2d   : > { %587 = dma.hbm_to_vmem [thread:$0]  (!%p881_p0), %s875_s6, 512, %s877_s8, %s886_s10, %s777_s5, %s777_s5, %s778_s7  }
  0x2e   : > { %p173_p12 = scmp.lt.s32.totalorder %s774_s17, 3  ;;  %p1012_p1 = scmp.ge.s32.totalorder %s774_s17, 1 }
  0x30   : > { %p174_p3 = pnand %p1012_p1, %p173_p12 }
  0x31   : > { %s918_s11 = sand.u32 (!%p174_p3), 1, %s758_s13  }
  0x32   : > { %177 = sbr.rel (%p174_p3) target bundleno = 437 (0x1b5), region = 32  ;;  %s511_s18 = sshll.u32 (!%p174_p3), %s918_s11, 5 }
  0x33   : > { %s180_s19 = scalar_lea.sflag (!%p174_p3), [#allocation3], %s918_s11  ;;  %s183_s21 = scalar_lea.vmem (!%p174_p3), [#allocation2], %s511_s18 }
  0x39   : > { %745 = dma.done.wait (%p853_p8), %s180_s19, 512  }
  0x3a   : > { %747 = vsyncadd (%p853_p8), %s180_s19, 4294966784  ;;  %v652_v0 = vld [vmem:[%s183_s21 + $0x10] ss:$8 sps:$4 sm:$0xff]   ;;  %v654_v1 = vld [vmem:[%s183_s21 + $0x14] ss:$8 sps:$4 sm:$0xff]   ;;  %s779_s6 = smov 127  }
  0x3b   : > { %252 = vrot.lane.b32.xlu1 %v652_v0, %s779_s6  ;;  %v655_v2 = vld [vmem:[%s183_s21] ss:$8 sps:$4 sm:$0xff]   ;;  %v657_v3 = vld [vmem:[%s183_s21 + $0x4] ss:$8 sps:$4 sm:$0xff]   ;;  %v659_v5 = vld [vmem:[%s183_s21 + $0x10] ss:$8 sps:$4 sm:$0xff]  }
  0x3c   : > { %v658_v4 = vld [vmem:[%s183_s21] ss:$8 sps:$4 sm:$0xff]   ;;  %237 = vrot.lane.b32.xlu0 %v655_v2, %s779_s6  ;;  %s780_s8 = smov 126   ;;  %vm316_vm0 = vcmask 916480   ;;  %v781_v7 = vmov 0   ;;  %s782_s10 = smov 125  }
  0x3d   : > { %562 = vmatprep.subr.bf16.mxu0 %v658_v4  ;;  %v660_v6 = vld [vmem:[%s1003_s1] sm:$0xff]   ;;  %651 = vset.pattern.permute.xlu1 %v781_v7  ;;  %v283_v8 = vld [vmem:[%s1004_s2 + $0x8] sm:$0xff]  ;;  %v284_v10 = vld [vmem:[%s1004_s2 + $0x10] sm:$0xff]  ;;  %vm241_vm1 = vcmask 1039360   ;;  %vm262_vm2 = vcmask 1031168   ;;  %vm275_vm3 = vcmask 1022976  }
  0x3e   : > { %563 = vmatpush3.bf16.msra.mxu0 %v658_v4  ;;  %576 = vmatprep.mubr.msk.bf16.mxu0 %vm316_vm0, %v660_v6  ;;  %v282_v9 = vld [vmem:[%s1004_s2] sm:$0xff]  ;;  %v285_v11 = vld [vmem:[%s1004_s2 + $0x18] sm:$0xff]  ;;  %v661_v27 = vld [vmem:[%s1003_s1 + $0x8] sm:$0xff]   ;;  %s512_s21 = sshll.u32 %s918_s11, 4  ;;  %s541_s24 = sshll.u32 %s766_s15, 8 }
  0x3f   : > { %254 = vrot.lane.b32.xlu1 %v654_v1, %s779_s6  ;;  %564 = vmatprep.subr.bf16.mxu0 %v659_v5  ;;  %s953_s22 = scalar_lea.hbm %s1005_s3, %s541_s24  ;;  %s405_s15 = scalar_lea.sflag [#allocation4], %s918_s11 }
  0x40   : > { %239 = vrot.lane.b32.xlu0 %v657_v3, %s779_s6  ;;  %s205_s6 = scalar_lea.vmem [#allocation5], %s512_s21  ;;  %p1013_p9 = scmp.ne.s32.totalorder %s1009_s25, 0 }
  0x41   : > { %650 = vset.pattern.permute.xlu0 %v781_v7  ;;  %s783_s28 = smov [#allocation5]  }
  0x42   : > { %565 = vmatpush3.bf16.msra.mxu0 %v659_v5  ;;  %s696_s29 = sshll.u32 %s783_s28, 4  ;;  %s697_s29 = int_to_ptr.vmem [resolvable:$false] %s696_s29 }
  0x43   : > { %260 = vrot.lane.b32.xlu1 %v657_v3, %s780_s8  ;;  %s698_s30 = scalar_lea.vmem %s697_s29, 512 }
  0x44   : > { %258 = vrot.lane.b32.xlu0 %v655_v2, %s780_s8 }
  0x47   : > { %267 = vrot.lane.b32.xlu1 %v654_v1, %s780_s8 }
  0x48   : > { %265 = vrot.lane.b32.xlu0 %v652_v0, %s780_s8  ;;  %s419_s8 = sshll.u32 %s205_s6, 4  ;;  %s948_s8 = int_to_ptr.vmem [resolvable:$true] %s419_s8 }
  0x49   : > { %s692_s23 = scalar_lea.vmem %s948_s8, 256  ;;  %p699_p6 = scmp.lt.s32.totalorder %s948_s8, %s697_s29 }
  0x4a   : > { %p693_p8 = scmp.ne.s32.totalorder %s948_s8, %s692_s23  ;;  %p700_p13 = scmp.lt.s32.totalorder %s698_s30, %s692_s23 }
  0x4b   : > { %273 = vrot.lane.b32.xlu1 %v657_v3, %s782_s10 }
  0x4c   : > { %271 = vrot.lane.b32.xlu0 %v655_v2, %s782_s10  ;;  %p694_p11 = pnand %p693_p8, %p1013_p9  ;;  %p701_p2 = por %p700_p13, %p699_p6 }
  0x4e   : > { %p695_p0 = pneg %p694_p11 }
  0x4f   : > { %293 = vperm.xlu1 %651, %v283_v8  }
  0x50   : > { %288 = vperm.xlu0 %650, %v282_v9   ;;  %p702_p5 = pnand %p701_p2, %p695_p0 }
  0x53   : > { %298 = vperm.xlu1 %651, %v284_v10  }
  0x54   : > { %303 = vperm.xlu0 %650, %v285_v11  }
  0xad   : > { %v253_v12 = vpop.permute.xlu1 %252 }
  0xae   : > { %v238_v13 = vpop.permute.xlu0 %237 }
  0xb1   : > { %v255_v14 = vpop.permute.xlu1 %254 }
  0xb2   : > { %v240_v15 = vpop.permute.xlu0 %239  ;;  %v256_v18 = vsel %vm241_vm1, %v253_v12, %v255_v14 }
  0xb3   : > { %v242_v16 = vsel %vm241_vm1, %v238_v13, %v240_v15 }
  0xb4   : > { %566 = vmatprep.subr.bf16.mxu0 %v242_v16 }
  0xb5   : > { %v261_v17 = vpop.permute.xlu1 %260  ;;  %567 = vmatpush3.bf16.msra.mxu0 %v242_v16 }
  0xb6   : > { %568 = vmatprep.subr.bf16.mxu0 %v256_v18  ;;  %v259_v19 = vpop.permute.xlu0 %258 }
  0xb7   : > { %v263_v20 = vsel %vm262_vm2, %v259_v19, %v261_v17 }
  0xb9   : > { %v268_v21 = vpop.permute.xlu1 %267  ;;  %569 = vmatpush3.bf16.msra.mxu0 %v256_v18 }
  0xba   : > { %570 = vmatprep.subr.bf16.mxu0 %v263_v20  ;;  %v266_v22 = vpop.permute.xlu0 %265 }
  0xbb   : > { %v269_v23 = vsel %vm262_vm2, %v266_v22, %v268_v21 }
  0xbd   : > { %v274_v24 = vpop.permute.xlu1 %273  ;;  %571 = vmatpush3.bf16.msra.mxu0 %v263_v20 }
  0xbe   : > { %572 = vmatprep.subr.bf16.mxu0 %v269_v23  ;;  %v272_v25 = vpop.permute.xlu0 %271 }
  0xbf   : > { %v276_v26 = vsel %vm275_vm3, %v272_v25, %v274_v24 }
  0xc1   : > { %573 = vmatpush3.bf16.msra.mxu0 %v269_v23 }
  0xc2   : > { %574 = vmatprep.subr.bf16.mxu0 %v276_v26 }
  0xc5   : > { %575 = vmatpush3.bf16.msra.mxu0 %v276_v26 }
  0xc8   : > { %577 = vmatmul.mubr.msk.bf16.vlgmr.msra.gmra.mrb[0].mxu0 %vm316_vm0, %v661_v27 }
  0xce   : > { %v294_v28 = vpop.permute.xlu1 %293 }
  0xcf   : > { %v289_v29 = vpop.permute.xlu0 %288 }
  0xd2   : > { %v299_v30 = vpop.permute.xlu1 %298 }
  0xd3   : > { %v304_v34 = vpop.permute.xlu0 %303 }
 0x19b   : > { %v578_v31 = vpop.f32.mrb[0].mxu0 }
 0x19c   : > { %v366_v32 = vadd.f32 %v578_v31, %v299_v30  ;;  %v357_v33 = vpop.f32.mrb[1].mxu0 }
 0x19d   : > { %v358_v35 = vadd.f32 %v357_v33, %v289_v29  ;;  %v579_v36 = vpop.f32.mrb[2].mxu0 }
 0x19e   : > { %v378_v37 = vmul.f32 0.1, %v366_v32  ;;  %v369_v38 = vadd.f32 %v579_v36, %v304_v34  ;;  %v360_v39 = vpop.f32.mrb[3].mxu0  ;;  %vm374_vm4 = vcmp.ge.f32.partialorder %v366_v32, 0.0 }
 0x19f   : > { %v376_v40 = vmul.f32 0.1, %v358_v35  ;;  %v361_v41 = vadd.f32 %v360_v39, %v294_v28  ;;  %vm372_vm5 = vcmp.ge.f32.partialorder %v358_v35, 0.0 }
 0x1a0   : > { %vm375_vm6 = vcmp.ge.f32.partialorder %v369_v38, 0.0  ;;  %v379_v42 = vmul.f32 0.1, %v369_v38  ;;  %v382_v44 = vsel %vm374_vm4, %v366_v32, %v378_v37 }
 0x1a1   : > { %vm373_vm7 = vcmp.ge.f32.partialorder %v361_v41, 0.0  ;;  %v377_v43 = vmul.f32 0.1, %v361_v41  ;;  %v380_v46 = vsel %vm372_vm5, %v358_v35, %v376_v40 }
 0x1a2   : > { %v383_v45 = vsel %vm375_vm6, %v369_v38, %v379_v42 }
 0x1a3   : > { %v550_v47 = vpack.c.bf16 %v383_v45, %v382_v44  ;;  %v381_v48 = vsel %vm373_vm7, %v361_v41, %v377_v43 }
 0x1a4   : > { %v545_v49 = vpack.c.bf16 %v381_v48, %v380_v46 }
 0x1a5   : > { %552 = vst [vmem:[%s205_s6 + $0x8] sm:$0xff] %v550_v47  }
 0x1a6   : > { %546 = vst [vmem:[%s205_s6] sm:$0xff] %v545_v49  }
 0x1a7   : > { %705 = shalt.err (!%p702_p5)
}
 0x1a8   : > { %s706_s4 = scalar_lea.hbm %s953_s22, 256  ;;  %s710_s18 = scalar_lea.hbm %s1005_s3, 512 }
 0x1a9   : > { %p707_p4 = scmp.ne.s32.totalorder %s953_s22, %s706_s4  ;;  %p711_p12 = scmp.lt.u32.totalorder %s953_s22, %s1005_s3 }
 0x1aa   : > { %p712_p1 = scmp.lt.u32.totalorder %s710_s18, %s706_s4  ;;  %p714_p8 = scmp.lt.u32.totalorder %s706_s4, %s953_s22 }
 0x1ab   : > { %p708_p7 = pnand %p707_p4, %p1013_p9 }
 0x1ac   : > { %p713_p3 = por %p712_p1, %p711_p12 }
 0x1ad   : > { %p709_p10 = pneg %p708_p7 }
 0x1ae   : > { %p715_p11 = por %p714_p8, %p713_p3 }
 0x1b0   : > { %p716_p0 = pnand %p715_p11, %p709_p10 }
 0x1b2   : > { %719 = shalt.err (!%p716_p0)
}
 0x1b3   : > { %s784_s6 = smov 64   ;;  %s785_s24 = smov 4  }
 0x1b4   : > { %582 = dma.vmem_to_hbm [thread:$0]  (%p1013_p9), %s948_s8, 256, %s953_s22, %s405_s15, %s784_s6, %s784_s6, %s785_s24  }
 0x1b5 PF: > { %s434_s9 = sand.u32 1, %s754_s12   ;;  %p1014_p6 = scmp.ne.s32.totalorder %s1010_s27, 0 }
 0x1b6   : > { %p1015_p13 = scmp.ge.s32.totalorder %s774_s17, 2  ;;  %s435_s10 = scalar_lea.sflag [#allocation4], %s434_s9 }
 0x1b8   : > { %p589_p2 = pnand %p1015_p13, %p1014_p6 }
 0x1ba   : > { %749 = dma.done.wait (!%p589_p2), %s435_s10, 256  }
 0x1bb   : > { %751 = vsyncadd (!%p589_p2), %s435_s10, 4294967040  ;;  %s19_s17 = sadd.s32 1, %s774_s17   ;;  %s1016_s12 = smov %s758_s13 }
 0x1bc   : > { %p16_p5 = scmp.ge.s32.totalorder %s19_s17, 4   ;;  %s1017_s13 = smov %s762_s14 }
 0x1bd   : > { %s1018_s14 = smov %s862_s26  ;;  %s1019_s15 = smov %s770_s16 }
 0x1be   : > { %s1020_s16 = smov %s1022_s20  ;;  %18 = sbr.rel (!%p16_p5) target bundleno = 6 (0x6), region = 78 }
 0x1c5   :  { %440 = vsyncpa [#allocation3], 1 }
 0x1c6   :  { %442 = vsyncpa [#allocation3 + $0x1], 1 }
 0x1c7   :  { %443 = vsyncpa [#allocation4], 1 }
 0x1c8   :  { %445 = vsyncpa [#allocation4 + $0x1], 1 }

</bundles_post_ra>
